<compile_context>
chip_gen: v7x
topology: tpu7x:2x2x1
jax: 0.10.0
libtpu: 0.0.40
codegen_flags: <defaults>
</compile_context>

<pallas_src>
import jax
import jax.numpy as jnp
from jax.experimental import pallas as pl
from jax.experimental.pallas import tpu as pltpu


def fcn_kernel(x_ref, w1_ref, b1_ref, w2_ref, b2_ref, o_ref):
    # fc1 on the MXU: (TM, D) @ (D, H), f32 accumulation.
    h = jnp.dot(x_ref[...], w1_ref[...], preferred_element_type=jnp.float32)
    # bias + ReLU on the VPU.
    h = jnp.maximum(h + b1_ref[...], 0.0)
    # fc2 (output width 1): VPU multiply + lane reduction against the (1, H)
    # weight row — avoids a degenerate 1-column MXU matmul entirely.
    z = jnp.sum(h * w2_ref[...], axis=-1, keepdims=True) + b2_ref[0]
    # Sigmoid: exp goes to the EUP slot.
    o_ref[...] = jax.nn.sigmoid(z).astype(o_ref.dtype)


def simple_fcn_pallas(x, w1, b1, w2, b2, *, block_rows=512):
    """sigmoid(relu(x @ w1 + b1) @ w2 + b2)

    x: (B, D)   w1: (D, H)   b1: (H,) or (1, H)   w2: (H, O=1)   b2: (O,)
    """
    x = x.astype(jnp.float32)
    B, D = x.shape
    H = w1.shape[1]
    O = w2.shape[1]

    w1 = w1.astype(jnp.float32)
    b1_row = b1.reshape(1, H).astype(jnp.float32)
    # fc2 weights presented to the kernel as a (1, H) row for the VPU reduction.
    w2_row = w2.reshape(1, H).astype(jnp.float32)
    b2_s = b2.reshape(O).astype(jnp.float32)

    # Batch tile: multiple of 8 (f32 sublane granularity), capped at block_rows.
    tm = min(block_rows, max(B, 8))
    tm = ((tm + 7) // 8) * 8
    n_tiles = pl.cdiv(B, tm)
    Bp = n_tiles * tm
    if Bp != B:
        x = jnp.pad(x, ((0, Bp - B), (0, 0)))

    cost = pl.CostEstimate(
        flops=2 * Bp * D * H + 3 * Bp * H,
        transcendentals=Bp,
        bytes_accessed=4 * (Bp * D + D * H + 2 * H + O + Bp * O),
    )

    out = pl.pallas_call(
        fcn_kernel,
        out_shape=jax.ShapeDtypeStruct((Bp, O), jnp.float32),
        grid_spec=pltpu.PrefetchScalarGridSpec(
            num_scalar_prefetch=0,
            grid=(n_tiles,),
            in_specs=[
                pl.BlockSpec((tm, D), lambda i: (i, 0)),             # x: batch tiled
                pl.BlockSpec((D, H), lambda i: (0, 0)),              # w1: VMEM-resident
                pl.BlockSpec((1, H), lambda i: (0, 0)),              # b1: VMEM-resident
                pl.BlockSpec((1, H), lambda i: (0, 0)),              # w2 row: VMEM-resident
                pl.BlockSpec(memory_space=pltpu.MemorySpace.SMEM),   # b2: scalar in SMEM
            ],
            out_specs=pl.BlockSpec((tm, O), lambda i: (i, 0)),
        ),
        compiler_params=pltpu.CompilerParams(
            dimension_semantics=("parallel",),  # megacore sharding on v7x
        ),
        cost_estimate=cost,
    )(x, w1, b1_row, w2_row, b2_s)

    return out[:B]


def simple_fcn_ref(x, w1, b1, w2, b2):
    h = jnp.maximum(x @ w1 + b1.reshape(1, -1), 0.0)
    return jax.nn.sigmoid(h @ w2 + b2)


if __name__ == "__main__":
    # VideoModel.fc = SimpleFCN(input_size=z_dim_2d + z_dim_3d,
    #                           hidden_size=(z_dim_2d + z_dim_3d) // 2,
    #                           output_size=1)
    Z2D, Z3D = 64, 64
    D = Z2D + Z3D        # 128 (lane-dense input)
    H = D // 2           # 64
    O = 1
    B = 256              # batch of concatenated latents; 2 grid tiles of 128 rows

    key = jax.random.PRNGKey(0)
    kz2, kz3, k1, kb1, k2, kb2 = jax.random.split(key, 6)

    # z = concat(z_2d, z_3d), as produced by the two VAE encoders upstream.
    z_2d = jax.random.normal(kz2, (B, Z2D), dtype=jnp.float32)
    z_3d = jax.random.normal(kz3, (B, Z3D), dtype=jnp.float32)
    x = jnp.concatenate([z_2d, z_3d], axis=1)

    # Deterministic parameter init (Kaiming-uniform-ish, like nn.Linear).
    lim1 = 1.0 / jnp.sqrt(D)
    w1 = jax.random.uniform(k1, (D, H), minval=-lim1, maxval=lim1, dtype=jnp.float32)
    b1 = jax.random.uniform(kb1, (H,), minval=-lim1, maxval=lim1, dtype=jnp.float32)
    lim2 = 1.0 / jnp.sqrt(H)
    w2 = jax.random.uniform(k2, (H, O), minval=-lim2, maxval=lim2, dtype=jnp.float32)
    b2 = jax.random.uniform(kb2, (O,), minval=-lim2, maxval=lim2, dtype=jnp.float32)

    out = simple_fcn_pallas(x, w1, b1, w2, b2, block_rows=128)
    out = jax.block_until_ready(out)

    ref = simple_fcn_ref(x, w1, b1, w2, b2)
    assert out.shape == (B, O), out.shape
    assert jnp.allclose(out, ref, atol=5e-5, rtol=1e-4), "mismatch vs reference"

    print("KERNEL_OK")
</pallas_src>

<mosaic_0001>
module attributes {stable_mosaic.version = 11 : i64} {
  func.func @fcn_kernel(%arg0: i32, %arg1: memref<128x128xf32, #tpu.memory_space<vmem>>, %arg2: memref<128x64xf32, #tpu.memory_space<vmem>>, %arg3: memref<1x64xf32, #tpu.memory_space<vmem>>, %arg4: memref<1x64xf32, #tpu.memory_space<vmem>>, %arg5: memref<1xf32, #tpu.memory_space<smem>>, %arg6: memref<128x1xf32, #tpu.memory_space<vmem>>) attributes {dimension_semantics = [#tpu.dimension_semantics<parallel>], iteration_bounds = array<i64: 2>, scalar_prefetch = 0 : i64, scratch_operands = 0 : i64, tpu.core_type = #tpu.core_type<tc>, window_params = [{transform_indices = @transform_0, window_bounds = array<i64: 128, 128>}, {pipeline_mode = #tpu.pipeline_mode<synchronous>, transform_indices = @transform_1, window_bounds = array<i64: 128, 64>}, {pipeline_mode = #tpu.pipeline_mode<synchronous>, transform_indices = @transform_2, window_bounds = array<i64: 1, 64>}, {pipeline_mode = #tpu.pipeline_mode<synchronous>, transform_indices = @transform_3, window_bounds = array<i64: 1, 64>}, {transform_indices = @transform_4, window_bounds = array<i64: 1>}, {transform_indices = @transform_5, window_bounds = array<i64: 128, 1>}]} {
    %c0 = arith.constant 0 : index
    %c0_0 = arith.constant 0 : index
    %0 = vector.load %arg1[%c0, %c0_0] : memref<128x128xf32, #tpu.memory_space<vmem>>, vector<128x128xf32>
    %c0_1 = arith.constant 0 : index
    %c0_2 = arith.constant 0 : index
    %1 = vector.load %arg2[%c0_1, %c0_2] : memref<128x64xf32, #tpu.memory_space<vmem>>, vector<128x64xf32>
    %cst = arith.constant dense<0.000000e+00> : vector<128x64xf32>
    %2 = tpu.matmul %0, %1, %cst {dimension_numbers = #tpu.dot_dimension_numbers<[1], [0], [0], [1], [0, 0, 1, 1], [], []>} : vector<128x128xf32>, vector<128x64xf32>, vector<128x64xf32> -> vector<128x64xf32>
    %c0_3 = arith.constant 0 : index
    %c0_4 = arith.constant 0 : index
    %3 = vector.load %arg3[%c0_3, %c0_4] : memref<1x64xf32, #tpu.memory_space<vmem>>, vector<1x64xf32>
    %4 = vector.broadcast %3 : vector<1x64xf32> to vector<128x64xf32>
    %5 = arith.addf %2, %4 : vector<128x64xf32>
    %cst_5 = arith.constant 0.000000e+00 : f32
    %6 = vector.broadcast %cst_5 : f32 to vector<128x64xf32>
    %7 = arith.maximumf %5, %6 : vector<128x64xf32>
    %c0_6 = arith.constant 0 : index
    %c0_7 = arith.constant 0 : index
    %8 = vector.load %arg4[%c0_6, %c0_7] : memref<1x64xf32, #tpu.memory_space<vmem>>, vector<1x64xf32>
    %9 = vector.broadcast %8 : vector<1x64xf32> to vector<128x64xf32>
    %10 = arith.mulf %7, %9 : vector<128x64xf32>
    %cst_8 = arith.constant dense<0.000000e+00> : vector<128xf32>
    %11 = vector.multi_reduction <add>, %10, %cst_8 [1] : vector<128x64xf32> to vector<128xf32>
    %12 = vector.shape_cast %11 : vector<128xf32> to vector<128x1xf32>
    %c0_9 = arith.constant 0 : index
    %13 = memref.load %arg5[%c0_9] : memref<1xf32, #tpu.memory_space<smem>>
    %14 = vector.broadcast %13 : f32 to vector<128x1xf32>
    %15 = arith.addf %12, %14 : vector<128x1xf32>
    %16 = arith.negf %15 : vector<128x1xf32>
    %17 = math.exp %16 : vector<128x1xf32>
    %cst_10 = arith.constant 1.000000e+00 : f32
    %18 = vector.broadcast %cst_10 : f32 to vector<128x1xf32>
    %19 = arith.addf %18, %17 : vector<128x1xf32>
    %20 = arith.divf %18, %19 : vector<128x1xf32>
    %c0_11 = arith.constant 0 : index
    %c0_12 = arith.constant 0 : index
    %21 = vector.load %arg6[%c0_11, %c0_12] : memref<128x1xf32, #tpu.memory_space<vmem>>, vector<128x1xf32>
    tpu.vector_store %arg6[%c0_11, %c0_12], %20 {strides = array<i32>} : memref<128x1xf32, #tpu.memory_space<vmem>>, vector<128x1xf32>,
    return
  }
  func.func @transform_0(%arg0: i32) -> (i32, i32) {
    %c0_i32 = arith.constant 0 : i32
    %c0_i32_0 = arith.constant 0 : i32
    return %arg0, %c0_i32 : i32, i32
  }
  func.func @transform_1(%arg0: i32) -> (i32, i32) {
    %c0_i32 = arith.constant 0 : i32
    %c0_i32_0 = arith.constant 0 : i32
    %c0_i32_1 = arith.constant 0 : i32
    return %c0_i32, %c0_i32_0 : i32, i32
  }
  func.func @transform_2(%arg0: i32) -> (i32, i32) {
    %c0_i32 = arith.constant 0 : i32
    %c0_i32_0 = arith.constant 0 : i32
    %c0_i32_1 = arith.constant 0 : i32
    return %c0_i32, %c0_i32_0 : i32, i32
  }
  func.func @transform_3(%arg0: i32) -> (i32, i32) {
    %c0_i32 = arith.constant 0 : i32
    %c0_i32_0 = arith.constant 0 : i32
    %c0_i32_1 = arith.constant 0 : i32
    return %c0_i32, %c0_i32_0 : i32, i32
  }
  func.func @transform_4(%arg0: i32) -> i32 {
    %c0_i32 = arith.constant 0 : i32
    %c0_i32_0 = arith.constant 0 : i32
    return %c0_i32 : i32
  }
  func.func @transform_5(%arg0: i32) -> (i32, i32) {
    %c0_i32 = arith.constant 0 : i32
    %c0_i32_0 = arith.constant 0 : i32
    return %arg0, %c0_i32 : i32, i32
  }
}

</mosaic_0001>

<bundles_post_ra>
// kernel: tpu_custom_call.1
= control target key start
LH: loop header
LB: loop body
LE: loop exit
PB: predicated region body
PF: predicated region fallthrough
CT: control target
= control target key end

     0   :  { %s1379_s0 = inlined_call_operand.hbm [shape: f32[256,128], index: 0, kind: input, shape index: {}]   ;;  %s1380_s1 = inlined_call_operand.vmem [shape: f32[128,64], index: 1, kind: input, shape index: {}]   ;;  %s1381_s2 = inlined_call_operand.vmem [shape: f32[1,64], index: 2, kind: input, shape index: {}]   ;;  %s1382_s3 = inlined_call_operand.vmem [shape: f32[1,64], index: 3, kind: input, shape index: {}]   ;;  %s1383_s4 = inlined_call_operand.<no memory space> [shape: f32[1], index: 4, kind: input, shape index: {}]   ;;  %s1384_s5 = inlined_call_operand.vmem [shape: f32[256,1], index: 5, kind: output, shape index: {}]  }
   0x1   :  { %10 = sst [smem:[#allocation2]] %s1383_s4 }
   0x2   :  { %11 = vsyncpa [#allocation4], 0 }
   0x3   :  { %13 = vsyncpa [#allocation4 + $0x1], 0  ;;  %s1093_s20 = smov 0   ;;  %s1095_s21 = smov 0  }
   0x4   :  { %s1097_s22 = smov 0   ;;  %s1099_s23 = smov 0  }
   0x5 LB: > { %s718_s4 = sadd.s32 4294967295, %s1055_s23   ;;  %s1113_s24 = sadd.s32 1, %s1055_s23   ;;  %s1055_s23 = sphi %s1099_s23, %s1391_s23   ;;  %s1051_s22 = sphi %s1097_s22, %s1390_s22   ;;  %s1047_s21 = sphi %s1095_s21, %s1389_s21   ;;  %s1043_s20 = sphi %s1093_s20, %s1388_s20  }
   0x6   : > { %s23_s25 = ssub.s32 %s1055_s23, %s1113_s24  ;;  %s26_s26 = sadd.s32 1, %s1051_s22 }
   0x7   : > { %p24_p0 = scmp.eq.s32.totalorder %s23_s25, 0  ;;  %p33_p1 = scmp.ne.s32.totalorder %s1051_s22, %s1047_s21 }
   0x8   : > { %p34_p2 = scmp.eq.s32.totalorder %s1055_s23, 0  ;;  %p39_p3 = scmp.ne.s32.totalorder %s1047_s21, %s1043_s20 }
   0x9   : > { %s1123_s27 = scalar_select %p24_p0, %s1051_s22, %s26_s26  }
   0xa   : > { %p35_p4 = por %p34_p2, %p33_p1  ;;  %p40_p5 = scmp.eq.s32.totalorder %s718_s4, 0 }
   0xb   : > { %p892_p6 = scmp.lt.s32.totalorder %s1055_s23, 2  ;;  %s185_s29 = sand.u32 1, %s1051_s22  }
   0xc   : > { %p1128_p7 = por %p40_p5, %p39_p3  ;;  %s722_s30 = sshll.u32 %s185_s29, 7 }
   0xd   : > { %s749_s6 = sshll.u32 %s1055_s23, 11  ;;  %s189_s10 = scalar_lea.vmem [#allocation3], %s722_s30 }
   0xe   : > { %s1137_s9 = scalar_lea.hbm %s1379_s0, %s749_s6  ;;  %s196_s11 = sshll.u32 %s189_s10, 4  ;;  %s1139_s11 = int_to_ptr.vmem [resolvable:$true] %s196_s11 }
   0xf   : > { %p1141_p8 = pnand %p892_p6, %p35_p4  ;;  %s1146_s13 = scalar_lea.sflag [#allocation4], %s185_s29 }
  0x10   : > { %s991_s14 = scalar_lea.hbm %s1137_s9, 2048  ;;  %s996_s17 = scalar_lea.hbm %s1379_s0, 4096 }
  0x11   : > { %p992_p10 = scmp.ne.s32.totalorder %s1137_s9, %s991_s14  ;;  %p993_p11 = pneg %p1141_p8 }
  0x12   : > { %p997_p0 = scmp.lt.u32.totalorder %s1137_s9, %s1379_s0  ;;  %p998_p1 = scmp.lt.u32.totalorder %s996_s17, %s991_s14 }
  0x13   : > { %p994_p12 = pnand %p993_p11, %p992_p10  ;;  %p1000_p3 = scmp.lt.u32.totalorder %s991_s14, %s1137_s9 }
  0x14   : > { %p999_p2 = por %p998_p1, %p997_p0 }
  0x15   : > { %p995_p13 = pneg %p994_p12 }
  0x16   : > { %p1001_p4 = por %p1000_p3, %p999_p2 }
  0x18   : > { %p1002_p5 = pnand %p1001_p4, %p995_p13 }
  0x1a   : > { %1005 = shalt.err (!%p1002_p5)
}
  0x1b   : > { %s1006_s20 = scalar_lea.vmem %s1139_s11, 2048  ;;  %s1057_s25 = smov [#allocation3]  }
  0x1c   : > { %p1007_p6 = scmp.ne.s32.totalorder %s1139_s11, %s1006_s20  ;;  %s1011_s26 = sshll.u32 %s1057_s25, 4  ;;  %s1012_s26 = int_to_ptr.vmem [resolvable:$false] %s1011_s26 }
  0x1d   : > { %s1013_s29 = scalar_lea.vmem %s1012_s26, 4096  ;;  %p1014_p9 = scmp.lt.s32.totalorder %s1139_s11, %s1012_s26 }
  0x1e   : > { %p1009_p10 = pnand %p1007_p6, %p993_p11  ;;  %p1015_p0 = scmp.lt.s32.totalorder %s1013_s29, %s1006_s20 }
  0x20   : > { %p1010_p12 = pneg %p1009_p10  ;;  %p1016_p1 = por %p1015_p0, %p1014_p9 }
  0x22   : > { %p1017_p2 = pnand %p1016_p1, %p1010_p12 }
  0x24   : > { %1020 = shalt.err (!%p1017_p2)
}
  0x25   : > { %s1058_s30 = smov 128   ;;  %s1059_s6 = smov 8  }
  0x26   : > { %891 = dma.hbm_to_vmem [thread:$0]  (!%p1141_p8), %s1137_s9, 2048, %s1139_s11, %s1146_s13, %s1058_s30, %s1058_s30, %s1059_s6  }
  0x27   : > { %p204_p11 = scmp.lt.s32.totalorder %s1055_s23, 3  ;;  %p1387_p13 = scmp.ge.s32.totalorder %s1055_s23, 1 }
  0x29   : > { %p205_p3 = pnand %p1387_p13, %p204_p11 }
  0x2a   : > { %s210_s7 = sand.u32 (!%p205_p3), 1, %s1047_s21  }
  0x2b   : > { %208 = sbr.rel (%p205_p3) target bundleno = 507 (0x1fb), region = 40  ;;  %s726_s8 = sshll.u32 (!%p205_p3), %s210_s7, 7 }
  0x2c   : > { %s211_s10 = scalar_lea.sflag (!%p205_p3), [#allocation4], %s210_s7  ;;  %s1178_s14 = scalar_lea.vmem (!%p205_p3), [#allocation3], %s726_s8 }
  0x32   : > { %1038 = dma.done.wait (%p1128_p7), %s211_s10, 2048  }
  0x33   : > { %1040 = vsyncadd (%p1128_p7), %s211_s10, 4294965248  ;;  %v264_v0 = vld [vmem:[%s1380_s1] sm:$0xff]  ;;  %v265_v1 = vld [vmem:[%s1380_s1 + $0x8] sm:$0xff]  ;;  %vm471_vm0 = vcmask 523264   ;;  %s520_s7 = sld [smem:[#allocation2]]  ;;  %s727_s8 = sshll.u32 %s718_s4, 4 }
  0x34   : > { %v266_v2 = vld [vmem:[%s1380_s1 + $0x10] sm:$0xff]  ;;  %v838_v3 = vpack.c.bf16 %v265_v1, %v264_v0  ;;  %v267_v4 = vld [vmem:[%s1380_s1 + $0x18] sm:$0xff]  ;;  %v268_v6 = vld [vmem:[%s1380_s1 + $0x20] sm:$0xff]  ;;  %p243_p7 = scmp.lt.s32.totalorder %s727_s8, 31  ;;  %vm634_vm1 = vcmask 7168  }
  0x35   : > { %v842_v5 = vpack.c.bf16 %v267_v4, %v266_v2  ;;  %v269_v7 = vld [vmem:[%s1380_s1 + $0x28] sm:$0xff]  ;;  %v248_v9 = vld [vmem:[%s1178_s14] sm:$0xff]  ;;  %v270_v11 = vld [vmem:[%s1380_s1 + $0x30] sm:$0xff] }
  0x36   : > { %839 = vmatprep.subr.bf16.mxu0 %v838_v3  ;;  %870 = vmatprep.subr.bf16.mxu1 %v838_v3  ;;  %v846_v8 = vpack.c.bf16 %v269_v7, %v268_v6  ;;  %v256_v10 = vld [vmem:[%s1178_s14 + $0x40] sm:$0xff]  ;;  %v271_v12 = vld [vmem:[%s1380_s1 + $0x38] sm:$0xff]  ;;  %v273_v15 = vld [vmem:[%s1380_s1 + $0x48] sm:$0xff]  ;;  %s1393_s8 = smov (!%p243_p7, %s727_s8), 31 }
  0x37   : > { %841 = vmatpush3.bf16.msra.mxu0 %v838_v3  ;;  %878 = vmatpush3.bf16.msra.mxu1 %v838_v3  ;;  %v850_v13 = vpack.c.bf16 %v271_v12, %v270_v11  ;;  %v272_v14 = vld [vmem:[%s1380_s1 + $0x40] sm:$0xff]  ;;  %v274_v17 = vld [vmem:[%s1380_s1 + $0x50] sm:$0xff]  ;;  %v275_v18 = vld [vmem:[%s1380_s1 + $0x58] sm:$0xff]  ;;  %s728_s23 = sshll.u32 %s1393_s8, 3 }
  0x38   : > { %843 = vmatprep.subr.bf16.mxu0 %v842_v5  ;;  %871 = vmatprep.subr.bf16.mxu1 %v842_v5  ;;  %v854_v16 = vpack.c.bf16 %v273_v15, %v272_v14  ;;  %v858_v19 = vpack.c.bf16 %v275_v18, %v274_v17  ;;  %v276_v20 = vld [vmem:[%s1380_s1 + $0x60] sm:$0xff]  ;;  %v277_v21 = vld [vmem:[%s1380_s1 + $0x68] sm:$0xff]  ;;  %v278_v23 = vld [vmem:[%s1380_s1 + $0x70] sm:$0xff]  ;;  %s1330_s15 = scalar_lea.vmem %s1384_s5, %s728_s23 }
  0x39   : > { %814 = vmatprep.mubr.f32.mxu0 %v248_v9  ;;  %826 = vmatprep.mubr.f32.mxu1 %v256_v10  ;;  %v862_v22 = vpack.c.bf16 %v277_v21, %v276_v20  ;;  %v279_v24 = vld [vmem:[%s1380_s1 + $0x78] sm:$0xff]  ;;  %v249_v26 = vld [vmem:[%s1178_s14 + $0x8] sm:$0xff]  ;;  %v250_v28 = vld [vmem:[%s1178_s14 + $0x10] sm:$0xff] }
  0x3a   : > { %v866_v25 = vpack.c.bf16 %v279_v24, %v278_v23  ;;  %v257_v27 = vld [vmem:[%s1178_s14 + $0x48] sm:$0xff]  ;;  %v258_v29 = vld [vmem:[%s1178_s14 + $0x50] sm:$0xff]  ;;  %v251_v30 = vld [vmem:[%s1178_s14 + $0x18] sm:$0xff] }
  0x3b   : > { %845 = vmatpush3.bf16.msra.mxu0 %v842_v5  ;;  %879 = vmatpush3.bf16.msra.mxu1 %v842_v5  ;;  %v259_v31 = vld [vmem:[%s1178_s14 + $0x58] sm:$0xff]  ;;  %v252_v32 = vld [vmem:[%s1178_s14 + $0x20] sm:$0xff]  ;;  %v253_v34 = vld [vmem:[%s1178_s14 + $0x28] sm:$0xff] }
  0x3c   : > { %847 = vmatprep.subr.bf16.mxu0 %v846_v8  ;;  %872 = vmatprep.subr.bf16.mxu1 %v846_v8  ;;  %v260_v33 = vld [vmem:[%s1178_s14 + $0x60] sm:$0xff]  ;;  %v261_v35 = vld [vmem:[%s1178_s14 + $0x68] sm:$0xff]  ;;  %v254_v36 = vld [vmem:[%s1178_s14 + $0x30] sm:$0xff] }
  0x3d   : > { %v262_v37 = vld [vmem:[%s1178_s14 + $0x70] sm:$0xff]  ;;  %v255_v38 = vld [vmem:[%s1178_s14 + $0x38] sm:$0xff]  ;;  %v1251_v40 = vld [vmem:[%s1381_s2] ss:$0 sm:$0xff] }
  0x3e   : > { %v263_v39 = vld [vmem:[%s1178_s14 + $0x78] sm:$0xff]  ;;  %v1260_v49 = vld [vmem:[%s1382_s3] ss:$0 sm:$0xff] }
  0x3f   : > { %849 = vmatpush3.bf16.msra.mxu0 %v846_v8  ;;  %880 = vmatpush3.bf16.msra.mxu1 %v846_v8 }
  0x40   : > { %851 = vmatprep.subr.bf16.mxu0 %v850_v13  ;;  %873 = vmatprep.subr.bf16.mxu1 %v850_v13 }
  0x43   : > { %853 = vmatpush3.bf16.msra.mxu0 %v850_v13  ;;  %881 = vmatpush3.bf16.msra.mxu1 %v850_v13 }
  0x44   : > { %855 = vmatprep.subr.bf16.mxu0 %v854_v16  ;;  %874 = vmatprep.subr.bf16.mxu1 %v854_v16 }
  0x47   : > { %857 = vmatpush3.bf16.msra.mxu0 %v854_v16  ;;  %882 = vmatpush3.bf16.msra.mxu1 %v854_v16 }
  0x48   : > { %859 = vmatprep.subr.bf16.mxu0 %v858_v19  ;;  %875 = vmatprep.subr.bf16.mxu1 %v858_v19 }
  0x4b   : > { %861 = vmatpush3.bf16.msra.mxu0 %v858_v19  ;;  %883 = vmatpush3.bf16.msra.mxu1 %v858_v19 }
  0x4c   : > { %863 = vmatprep.subr.bf16.mxu0 %v862_v22  ;;  %876 = vmatprep.subr.bf16.mxu1 %v862_v22 }
  0x4f   : > { %865 = vmatpush3.bf16.msra.mxu0 %v862_v22  ;;  %884 = vmatpush3.bf16.msra.mxu1 %v862_v22 }
  0x50   : > { %867 = vmatprep.subr.bf16.mxu0 %v866_v25  ;;  %877 = vmatprep.subr.bf16.mxu1 %v866_v25 }
  0x53   : > { %869 = vmatpush3.bf16.msra.mxu0 %v866_v25  ;;  %885 = vmatpush3.bf16.msra.mxu1 %v866_v25 }
  0x56   : > { %815 = vmatmul.mubr.f32.vlgmr.msra.gmra.mrb[0].mxu0 %v249_v26  ;;  %827 = vmatmul.mubr.f32.vlgmr.msra.gmra.mrb[0].mxu1 %v257_v27 }
  0x57   : > { %817 = vmatprep.mubr.f32.mxu0 %v250_v28  ;;  %829 = vmatprep.mubr.f32.mxu1 %v258_v29 }
  0x5a   : > { %818 = vmatmul.mubr.f32.gmra.mrb[2].mxu0 %v251_v30  ;;  %830 = vmatmul.mubr.f32.gmra.mrb[2].mxu1 %v259_v31 }
  0x5b   : > { %820 = vmatprep.mubr.f32.mxu0 %v252_v32  ;;  %832 = vmatprep.mubr.f32.mxu1 %v260_v33 }
  0x5e   : > { %821 = vmatmul.mubr.f32.gmra.mrb[4].mxu0 %v253_v34  ;;  %833 = vmatmul.mubr.f32.gmra.mrb[4].mxu1 %v261_v35 }
  0x5f   : > { %823 = vmatprep.mubr.f32.mxu0 %v254_v36  ;;  %835 = vmatprep.mubr.f32.mxu1 %v262_v37 }
  0x62   : > { %824 = vmatmul.mubr.f32.gmra.mrb[6].mxu0 %v255_v38  ;;  %836 = vmatmul.mubr.f32.gmra.mrb[6].mxu1 %v263_v39 }
 0x129   : > { %v816_v41 = vpop.f32.mrb[0].mxu0  ;;  %v828_v42 = vpop.f32.mrb[0].mxu1 }
 0x12a   : > { %v359_v43 = vadd.f32 %v816_v41, %v1251_v40  ;;  %v399_v44 = vadd.f32 %v828_v42, %v1251_v40  ;;  %v353_v45 = vpop.f32.mrb[1].mxu0  ;;  %v393_v46 = vpop.f32.mrb[1].mxu1 }
 0x12b   : > { %v354_v47 = vadd.f32 %v1251_v40, %v353_v45  ;;  %v394_v48 = vadd.f32 %v1251_v40, %v393_v46 }
 0x12c   : > { %v433_v50 = vmax.f32 %v359_v43, 0.0  ;;  %v441_v51 = vmax.f32 %v399_v44, 0.0 }
 0x12d   : > { %v432_v52 = vmax.f32 %v354_v47, 0.0  ;;  %v819_v53 = vpop.f32.mrb[2].mxu0  ;;  %v831_v54 = vpop.f32.mrb[2].mxu1  ;;  %v440_v61 = vmax.f32 %v394_v48, 0.0 }
 0x12e   : > { %v369_v55 = vadd.f32 %v819_v53, %v1251_v40  ;;  %v363_v56 = vpop.f32.mrb[3].mxu0  ;;  %v409_v57 = vadd.f32 %v831_v54, %v1251_v40  ;;  %v464_v58 = vmul.f32 %v1260_v49, %v441_v51  ;;  %v403_v59 = vpop.f32.mrb[3].mxu1  ;;  %v456_v60 = vmul.f32 %v1260_v49, %v433_v50 }
 0x12f   : > { %v364_v62 = vadd.f32 %v1251_v40, %v363_v56  ;;  %v404_v63 = vadd.f32 %v1251_v40, %v403_v59  ;;  %v455_v0 = vmul.f32 %v1260_v49, %v432_v52  ;;  %v463_v13 = vmul.f32 %v1260_v49, %v440_v61 }
 0x130   : > { %v435_v1 = vmax.f32 %v369_v55, 0.0  ;;  %v443_v2 = vmax.f32 %v409_v57, 0.0  ;;  %v499_v3 = vsel %vm471_vm0, %v464_v58, 0.0  ;;  %v475_v4 = vsel %vm471_vm0, %v456_v60, 0.0 }
 0x131   : > { %500 = vadd.xlane.f32.xlu1 %v499_v3  ;;  %476 = vadd.xlane.f32.xlu0 %v475_v4  ;;  %v822_v5 = vpop.f32.mrb[4].mxu0  ;;  %v834_v6 = vpop.f32.mrb[4].mxu1  ;;  %v434_v14 = vmax.f32 %v364_v62, 0.0  ;;  %v442_v15 = vmax.f32 %v404_v63, 0.0  ;;  %v472_v17 = vsel %vm471_vm0, %v455_v0, 0.0  ;;  %v496_v27 = vsel %vm471_vm0, %v463_v13, 0.0 }
 0x132   : > { %v458_v7 = vmul.f32 %v1260_v49, %v435_v1  ;;  %v379_v8 = vadd.f32 %v822_v5, %v1251_v40  ;;  %v373_v9 = vpop.f32.mrb[5].mxu0  ;;  %v466_v10 = vmul.f32 %v1260_v49, %v443_v2  ;;  %v413_v11 = vpop.f32.mrb[5].mxu1  ;;  %v419_v18 = vadd.f32 %v834_v6, %v1251_v40 }
 0x133   : > { %v374_v12 = vadd.f32 %v1251_v40, %v373_v9  ;;  %v414_v19 = vadd.f32 %v1251_v40, %v413_v11  ;;  %v457_v28 = vmul.f32 %v1260_v49, %v434_v14  ;;  %v465_v29 = vmul.f32 %v1260_v49, %v442_v15 }
 0x134   : > { %v481_v16 = vsel %vm471_vm0, %v458_v7, 0.0  ;;  %v437_v22 = vmax.f32 %v379_v8, 0.0  ;;  %v505_v24 = vsel %vm471_vm0, %v466_v10, 0.0  ;;  %v445_v30 = vmax.f32 %v419_v18, 0.0 }
 0x135   : > { %482 = vadd.xlane.f32.xlu1 %v481_v16  ;;  %473 = vadd.xlane.f32.xlu0 %v472_v17  ;;  %v825_v20 = vpop.f32.mrb[6].mxu0  ;;  %v837_v21 = vpop.f32.mrb[6].mxu1  ;;  %v436_v23 = vmax.f32 %v374_v12, 0.0  ;;  %v444_v31 = vmax.f32 %v414_v19, 0.0  ;;  %v478_v36 = vsel %vm471_vm0, %v457_v28, 0.0  ;;  %v502_v37 = vsel %vm471_vm0, %v465_v29, 0.0 }
 0x136   : > { %v383_v25 = vpop.f32.mrb[7].mxu0  ;;  %v423_v26 = vpop.f32.mrb[7].mxu1  ;;  %v389_v32 = vadd.f32 %v825_v20, %v1251_v40  ;;  %v460_v34 = vmul.f32 %v1260_v49, %v437_v22  ;;  %v429_v38 = vadd.f32 %v837_v21, %v1251_v40  ;;  %v468_v41 = vmul.f32 %v1260_v49, %v445_v30 }
 0x137   : > { %v384_v33 = vadd.f32 %v1251_v40, %v383_v25  ;;  %v459_v35 = vmul.f32 %v1260_v49, %v436_v23  ;;  %v424_v39 = vadd.f32 %v1251_v40, %v423_v26  ;;  %v467_v42 = vmul.f32 %v1260_v49, %v444_v31 }
 0x138   : > { %v439_v43 = vmax.f32 %v389_v32, 0.0  ;;  %v487_v45 = vsel %vm471_vm0, %v460_v34, 0.0  ;;  %v447_v47 = vmax.f32 %v429_v38, 0.0  ;;  %v511_v48 = vsel %vm471_vm0, %v468_v41, 0.0 }
 0x139   : > { %506 = vadd.xlane.f32.xlu1 %v505_v24  ;;  %497 = vadd.xlane.f32.xlu0 %v496_v27  ;;  %v438_v44 = vmax.f32 %v384_v33, 0.0  ;;  %v484_v46 = vsel %vm471_vm0, %v459_v35, 0.0  ;;  %v446_v50 = vmax.f32 %v424_v39, 0.0  ;;  %v508_v51 = vsel %vm471_vm0, %v467_v42, 0.0 }
 0x13a   : > { %v462_v40 = vmul.f32 %v1260_v49, %v439_v43  ;;  %v470_v55 = vmul.f32 %v1260_v49, %v447_v47  ;;  %v1306_v59 = vstv %s520_s7 }
 0x13b   : > { %v461_v52 = vmul.f32 %v1260_v49, %v438_v44  ;;  %v469_v56 = vmul.f32 %v1260_v49, %v446_v50 }
 0x13c   : > { %v493_v53 = vsel %vm471_vm0, %v462_v40, 0.0  ;;  %v517_v57 = vsel %vm471_vm0, %v470_v55, 0.0 }
 0x13d   : > { %479 = vadd.xlane.f32.xlu1 %v478_v36  ;;  %503 = vadd.xlane.f32.xlu0 %v502_v37  ;;  %v490_v54 = vsel %vm471_vm0, %v461_v52, 0.0  ;;  %v514_v58 = vsel %vm471_vm0, %v469_v56, 0.0 }
 0x141   : > { %488 = vadd.xlane.f32.xlu1 %v487_v45  ;;  %485 = vadd.xlane.f32.xlu0 %v484_v46 }
 0x145   : > { %512 = vadd.xlane.f32.xlu1 %v511_v48  ;;  %509 = vadd.xlane.f32.xlu0 %v508_v51 }
 0x149   : > { %494 = vadd.xlane.f32.xlu1 %v493_v53  ;;  %491 = vadd.xlane.f32.xlu0 %v490_v54 }
 0x14d   : > { %518 = vadd.xlane.f32.xlu1 %v517_v57  ;;  %515 = vadd.xlane.f32.xlu0 %v514_v58 }
 0x1be   : > { %v501_v60 = vpop.xlane.xlu1 %500  ;;  %v477_v61 = vpop.xlane.xlu0 %476 }
 0x1bf   : > { %v531_v62 = vadd.f32 %v1306_v59, %v501_v60  ;;  %v523_v63 = vadd.f32 %v1306_v59, %v477_v61 }
 0x1c1   : > { %v740_v0 = vmul.f32 -1.442695, %v531_v62  ;;  %v732_v1 = vmul.f32 -1.442695, %v523_v63 }
 0x1c2   : > { %v483_v49 = vpop.xlane.xlu1 %482  ;;  %v474_v2 = vpop.xlane.xlu0 %473 }
 0x1c3   : > { %927 = vpow2.f32 %v740_v0  ;;  %v525_v3 = vadd.f32 %v1306_v59, %v483_v49  ;;  %v522_v4 = vadd.f32 %v1306_v59, %v474_v2 }
 0x1c4   : > { %929 = vpow2.f32 %v732_v1 }
 0x1c5   : > { %v734_v5 = vmul.f32 -1.442695, %v525_v3  ;;  %v731_v6 = vmul.f32 -1.442695, %v522_v4 }
 0x1c6   : > { %v507_v7 = vpop.xlane.xlu1 %506  ;;  %v498_v8 = vpop.xlane.xlu0 %497 }
 0x1c7   : > { %931 = vpow2.f32 %v734_v5  ;;  %v533_v9 = vadd.f32 %v1306_v59, %v507_v7  ;;  %v530_v10 = vadd.f32 %v1306_v59, %v498_v8 }
 0x1c8   : > { %933 = vpow2.f32 %v731_v6 }
 0x1c9   : > { %v742_v11 = vmul.f32 -1.442695, %v533_v9  ;;  %v739_v12 = vmul.f32 -1.442695, %v530_v10 }
 0x1ca   : > { %v480_v13 = vpop.xlane.xlu1 %479  ;;  %v504_v14 = vpop.xlane.xlu0 %503 }
 0x1cb   : > { %935 = vpow2.f32 %v742_v11  ;;  %v524_v15 = vadd.f32 %v1306_v59, %v480_v13  ;;  %v532_v16 = vadd.f32 %v1306_v59, %v504_v14 }
 0x1cc   : > { %937 = vpow2.f32 %v739_v12 }
 0x1cd   : > { %v928_v17 = vpop.eup %927  ;;  %v733_v18 = vmul.f32 -1.442695, %v524_v15  ;;  %v741_v21 = vmul.f32 -1.442695, %v532_v16 }
 0x1ce   : > { %v930_v19 = vpop.eup %929  ;;  %v595_v20 = vadd.f32 1.0, %v928_v17  ;;  %v489_v22 = vpop.xlane.xlu1 %488 }
 0x1cf   : > { %v486_v23 = vpop.xlane.xlu0 %485  ;;  %v587_v24 = vadd.f32 1.0, %v930_v19  ;;  %939 = vpow2.f32 %v733_v18  ;;  %v527_v25 = vadd.f32 %v1306_v59, %v489_v22 }
 0x1d0   : > { %v526_v26 = vadd.f32 %v1306_v59, %v486_v23  ;;  %941 = vrcp.f32 %v595_v20 }
 0x1d1   : > { %v932_v27 = vpop.eup %931  ;;  %943 = vrcp.f32 %v587_v24  ;;  %v736_v28 = vmul.f32 -1.442695, %v527_v25 }
 0x1d2   : > { %v934_v29 = vpop.eup %933  ;;  %v589_v30 = vadd.f32 1.0, %v932_v27  ;;  %945 = vpow2.f32 %v741_v21  ;;  %v735_v31 = vmul.f32 -1.442695, %v526_v26  ;;  %v513_v32 = vpop.xlane.xlu1 %512 }
 0x1d3   : > { %v510_v33 = vpop.xlane.xlu0 %509  ;;  %v586_v34 = vadd.f32 1.0, %v934_v29  ;;  %947 = vpow2.f32 %v736_v28  ;;  %v535_v35 = vadd.f32 %v1306_v59, %v513_v32 }
 0x1d4   : > { %v534_v36 = vadd.f32 %v1306_v59, %v510_v33  ;;  %949 = vrcp.f32 %v589_v30 }
 0x1d5   : > { %v936_v37 = vpop.eup %935  ;;  %951 = vrcp.f32 %v586_v34  ;;  %v744_v38 = vmul.f32 -1.442695, %v535_v35 }
 0x1d6   : > { %v938_v39 = vpop.eup %937  ;;  %v597_v41 = vadd.f32 1.0, %v936_v37  ;;  %953 = vpow2.f32 %v735_v31  ;;  %v743_v42 = vmul.f32 -1.442695, %v534_v36  ;;  %v495_v43 = vpop.xlane.xlu1 %494 }
 0x1d7   : > { %v492_v44 = vpop.xlane.xlu0 %491  ;;  %v594_v45 = vadd.f32 1.0, %v938_v39  ;;  %955 = vpow2.f32 %v744_v38  ;;  %v529_v46 = vadd.f32 %v1306_v59, %v495_v43 }
 0x1d8   : > { %v528_v47 = vadd.f32 %v1306_v59, %v492_v44  ;;  %957 = vrcp.f32 %v597_v41 }
 0x1d9   : > { %v940_v48 = vpop.eup %939  ;;  %959 = vrcp.f32 %v594_v45  ;;  %v738_v50 = vmul.f32 -1.442695, %v529_v46 }
 0x1da   : > { %v737_v51 = vmul.f32 -1.442695, %v528_v47  ;;  %v942_v40 = vpop.eup %941  ;;  %v588_v52 = vadd.f32 1.0, %v940_v48  ;;  %961 = vpow2.f32 %v743_v42  ;;  %v519_v53 = vpop.xlane.xlu1 %518 }
 0x1db   : > { %v516_v54 = vpop.xlane.xlu0 %515  ;;  %v944_v55 = vpop.eup %943  ;;  %644 = vst.msk [vmem:[%s1330_s15 + $0x48] sm:$0xff] %vm634_vm1, %v942_v40  ;;  %963 = vpow2.f32 %v738_v50  ;;  %v537_v56 = vadd.f32 %v1306_v59, %v519_v53 }
 0x1dc   : > { %v536_v57 = vadd.f32 %v1306_v59, %v516_v54  ;;  %v946_v58 = vpop.eup %945  ;;  %636 = vst.msk [vmem:[%s1330_s15 + $0x8] sm:$0xff] %vm634_vm1, %v944_v55  ;;  %965 = vrcp.f32 %v588_v52 }
 0x1dd   : > { %v948_v60 = vpop.eup %947  ;;  %v596_v61 = vadd.f32 1.0, %v946_v58  ;;  %967 = vpow2.f32 %v737_v51  ;;  %v746_v62 = vmul.f32 -1.442695, %v537_v56 }
 0x1de   : > { %v950_v63 = vpop.eup %949  ;;  %v591_v0 = vadd.f32 1.0, %v948_v60  ;;  %v745_v1 = vmul.f32 -1.442695, %v536_v57 }
 0x1df   : > { %v952_v49 = vpop.eup %951  ;;  %638 = vst.msk [vmem:[%s1330_s15 + $0x18] sm:$0xff] %vm634_vm1, %v950_v63  ;;  %969 = vrcp.f32 %v596_v61 }
 0x1e0   : > { %v954_v2 = vpop.eup %953  ;;  %635 = vst.msk [vmem:[%s1330_s15] sm:$0xff] %vm634_vm1, %v952_v49  ;;  %971 = vrcp.f32 %v591_v0 }
 0x1e1   : > { %v956_v59 = vpop.eup %955  ;;  %v590_v3 = vadd.f32 1.0, %v954_v2  ;;  %973 = vpow2.f32 %v746_v62 }
 0x1e2   : > { %v958_v4 = vpop.eup %957  ;;  %v599_v5 = vadd.f32 1.0, %v956_v59  ;;  %975 = vpow2.f32 %v745_v1 }
 0x1e3   : > { %v960_v6 = vpop.eup %959  ;;  %646 = vst.msk [vmem:[%s1330_s15 + $0x58] sm:$0xff] %vm634_vm1, %v958_v4  ;;  %977 = vrcp.f32 %v590_v3 }
 0x1e4   : > { %v962_v7 = vpop.eup %961  ;;  %643 = vst.msk [vmem:[%s1330_s15 + $0x40] sm:$0xff] %vm634_vm1, %v960_v6  ;;  %979 = vrcp.f32 %v599_v5 }
 0x1e5   : > { %v964_v8 = vpop.eup %963  ;;  %v598_v9 = vadd.f32 1.0, %v962_v7 }
 0x1e6   : > { %v966_v10 = vpop.eup %965  ;;  %v593_v11 = vadd.f32 1.0, %v964_v8 }
 0x1e7   : > { %v968_v12 = vpop.eup %967  ;;  %637 = vst.msk [vmem:[%s1330_s15 + $0x10] sm:$0xff] %vm634_vm1, %v966_v10  ;;  %981 = vrcp.f32 %v598_v9 }
 0x1e8   : > { %983 = vrcp.f32 %v593_v11  ;;  %v592_v13 = vadd.f32 1.0, %v968_v12 }
 0x1e9   : > { %v970_v14 = vpop.eup %969 }
 0x1ea   : > { %v972_v15 = vpop.eup %971  ;;  %645 = vst.msk [vmem:[%s1330_s15 + $0x50] sm:$0xff] %vm634_vm1, %v970_v14  ;;  %985 = vrcp.f32 %v592_v13 }
 0x1eb   : > { %v974_v16 = vpop.eup %973  ;;  %640 = vst.msk [vmem:[%s1330_s15 + $0x28] sm:$0xff] %vm634_vm1, %v972_v15 }
 0x1ec   : > { %v976_v17 = vpop.eup %975  ;;  %v601_v18 = vadd.f32 1.0, %v974_v16 }
 0x1ed   : > { %v978_v19 = vpop.eup %977  ;;  %v600_v20 = vadd.f32 1.0, %v976_v17 }
 0x1ee   : > { %v980_v21 = vpop.eup %979  ;;  %639 = vst.msk [vmem:[%s1330_s15 + $0x20] sm:$0xff] %vm634_vm1, %v978_v19  ;;  %987 = vrcp.f32 %v601_v18 }
 0x1ef   : > { %648 = vst.msk [vmem:[%s1330_s15 + $0x68] sm:$0xff] %vm634_vm1, %v980_v21  ;;  %989 = vrcp.f32 %v600_v20 }
 0x1f1   : > { %v982_v22 = vpop.eup %981 }
 0x1f2   : > { %v984_v23 = vpop.eup %983  ;;  %647 = vst.msk [vmem:[%s1330_s15 + $0x60] sm:$0xff] %vm634_vm1, %v982_v22 }
 0x1f3   : > { %642 = vst.msk [vmem:[%s1330_s15 + $0x38] sm:$0xff] %vm634_vm1, %v984_v23 }
 0x1f4   : > { %v986_v24 = vpop.eup %985 }
 0x1f5   : > { %641 = vst.msk [vmem:[%s1330_s15 + $0x30] sm:$0xff] %vm634_vm1, %v986_v24 }
 0x1f8   : > { %v988_v25 = vpop.eup %987 }
 0x1f9   : > { %v990_v26 = vpop.eup %989  ;;  %650 = vst.msk [vmem:[%s1330_s15 + $0x78] sm:$0xff] %vm634_vm1, %v988_v25 }
 0x1fa   : > { %649 = vst.msk [vmem:[%s1330_s15 + $0x70] sm:$0xff] %vm634_vm1, %v990_v26 }
 0x1fb PF: > { %p16_p8 = scmp.ge.s32.totalorder %s1113_s24, 4   ;;  %s1388_s20 = smov %s1047_s21 }
 0x1fc   : > { %s1389_s21 = smov %s1051_s22  ;;  %s1390_s22 = smov %s1123_s27 }
 0x1fd   : > { %s1391_s23 = smov %s1113_s24  ;;  %18 = sbr.rel (!%p16_p8) target bundleno = 5 (0x5), region = 80 }
 0x204   :  { %673 = vsyncpa [#allocation4], 1 }
 0x205   :  { %675 = vsyncpa [#allocation4 + $0x1], 1 }

</bundles_post_ra>
